<compile_context>
chip_gen: v7x
topology: tpu7x:2x2x1
jax: 0.10.0
libtpu: 0.0.40
codegen_flags: <defaults>
</compile_context>

<pallas_src>
import jax
import jax.numpy as jnp
from jax import lax
from jax.experimental import pallas as pl
from jax.experimental.pallas import tpu as pltpu


def _round_up(x, m):
    return ((x + m - 1) // m) * m


def _pick_tile(size_padded, base, cap, min_blocks=1):
    """Largest multiple of `base` that divides `size_padded`, is <= cap, and
    leaves at least `min_blocks` blocks.  Falls back to `base`."""
    best = base
    t = base
    limit = min(cap, size_padded)
    while t <= limit:
        if size_padded % t == 0 and size_padded // t >= min_blocks:
            best = t
        t += base
    return best


# --------------------------------------------------------------------------
# Kernels
# --------------------------------------------------------------------------
def _linear_kernel_single(x_ref, w_ref, b_ref, o_ref):
    """Single reduction step: o = x @ W + b  (W already in (K, N) layout)."""
    acc = lax.dot_general(
        x_ref[...], w_ref[...],
        dimension_numbers=(((1,), (0,)), ((), ())),
        preferred_element_type=jnp.float32,
    )
    o_ref[...] = (acc + b_ref[...]).astype(o_ref.dtype)


def _linear_kernel_acc(x_ref, w_ref, b_ref, o_ref, acc_ref):
    """Multi-step reduction over the trailing k grid axis with f32 scratch."""
    k = pl.program_id(2)

    @pl.when(k == 0)
    def _init():
        acc_ref[...] = jnp.zeros_like(acc_ref)

    acc_ref[...] += lax.dot_general(
        x_ref[...], w_ref[...],
        dimension_numbers=(((1,), (0,)), ((), ())),
        preferred_element_type=jnp.float32,
    )

    @pl.when(k == pl.num_programs(2) - 1)
    def _finalize():
        o_ref[...] = (acc_ref[...] + b_ref[...]).astype(o_ref.dtype)


# --------------------------------------------------------------------------
# Module wrapper (mirrors torch.nn.Linear / linearRegression.forward)
# --------------------------------------------------------------------------
class LinearRegressionPallas:
    """Holds pre-padded, pre-transposed parameters; forward() is the kernel."""

    def __init__(self, weight, bias, compute_dtype=None):
        # weight: [out_features, in_features] (PyTorch convention), bias: [out]
        self.out_features, self.in_features = weight.shape
        assert bias.shape == (self.out_features,)
        self.n_p = _round_up(self.out_features, 128)
        self.k_p = _round_up(self.in_features, 128)
        self.compute_dtype = compute_dtype

        # One fused transpose+pad copy at construction time (not per forward):
        # (out, in) -> (K_p, N_p), lane-dense on the N axis.
        w_kn = jnp.pad(
            weight,
            ((0, self.n_p - self.out_features), (0, self.k_p - self.in_features)),
        ).T
        if compute_dtype is not None:
            w_kn = w_kn.astype(compute_dtype)
        self.w_kn = w_kn
        self.b_pad = (
            jnp.pad(bias, (0, self.n_p - self.out_features))
            .astype(jnp.float32)
            .reshape(1, self.n_p)
        )

    def __call__(self, x):
        B, K = x.shape
        assert K == self.in_features, "x last dim must equal input_size"
        out_dtype = x.dtype
        cd = self.compute_dtype if self.compute_dtype is not None else x.dtype

        # --- tile selection -------------------------------------------------
        sub = 16 if cd == jnp.bfloat16 else 8   # bf16 sublane packing
        b_p8 = _round_up(B, sub)
        tm = _pick_tile(b_p8, sub, 256)
        b_p = _round_up(b_p8, tm)

        gemv = tm <= 64                          # tiny-batch / GEMV regime
        cap_tk = 2048 if gemv else 1024          # bigger streamed weight tiles
        cap_tn = 512
        # v7x: if the batch axis has a single block, make sure the out axis
        # has >=2 blocks so both TensorCores get work.
        min_j_blocks = 2 if (b_p // tm) == 1 else 1
        tn = _pick_tile(self.n_p, 128, cap_tn, min_j_blocks)
        tk = _pick_tile(self.k_p, 128, cap_tk)

        grid_i = b_p // tm
        grid_j = self.n_p // tn
        nk = self.k_p // tk

        # --- prepare activations (pad only if actually unaligned) -----------
        x_p = x
        if (b_p, self.k_p) != (B, K):
            x_p = jnp.pad(x, ((0, b_p - B), (0, self.k_p - K)))
        if x_p.dtype != cd:
            x_p = x_p.astype(cd)

        # --- VMEM budget from the actual working set ------------------------
        x_item = jnp.dtype(cd).itemsize
        w_item = jnp.dtype(self.w_kn.dtype).itemsize
        o_item = jnp.dtype(out_dtype).itemsize
        in_bytes = tm * tk * x_item + tk * tn * w_item + tn * 4
        out_bytes = tm * tn * o_item
        acc_bytes = 0 if nk == 1 else tm * tn * 4
        need = 2 * (in_bytes + out_bytes) + acc_bytes
        # 50% headroom, floor 8 MiB, cap 48 MiB (fits v7x's 64 MiB / TC).
        vmem = int(min(max(int(need * 1.5), 8 * 1024 * 1024), 48 * 1024 * 1024))

        if nk == 1:
            # Fast path: whole reduction in one tile, no accumulator scratch.
            out_p = pl.pallas_call(
                _linear_kernel_single,
                out_shape=jax.ShapeDtypeStruct((b_p, self.n_p), out_dtype),
                grid_spec=pltpu.PrefetchScalarGridSpec(
                    num_scalar_prefetch=0,
                    grid=(grid_i, grid_j),
                    in_specs=[
                        pl.BlockSpec((tm, tk), lambda i, j: (i, 0)),   # x
                        pl.BlockSpec((tk, tn), lambda i, j: (0, j)),   # W (K,N)
                        pl.BlockSpec((1, tn), lambda i, j: (0, j)),    # bias
                    ],
                    out_specs=pl.BlockSpec((tm, tn), lambda i, j: (i, j)),
                ),
                compiler_params=pltpu.CompilerParams(
                    dimension_semantics=("parallel", "parallel"),
                    vmem_limit_bytes=vmem,
                ),
            )(x_p, self.w_kn, self.b_pad)
        else:
            out_p = pl.pallas_call(
                _linear_kernel_acc,
                out_shape=jax.ShapeDtypeStruct((b_p, self.n_p), out_dtype),
                grid_spec=pltpu.PrefetchScalarGridSpec(
                    num_scalar_prefetch=0,
                    grid=(grid_i, grid_j, nk),
                    in_specs=[
                        pl.BlockSpec((tm, tk), lambda i, j, k: (i, k)),  # x
                        pl.BlockSpec((tk, tn), lambda i, j, k: (k, j)),  # W (K,N)
                        pl.BlockSpec((1, tn), lambda i, j, k: (0, j)),   # bias
                    ],
                    out_specs=pl.BlockSpec((tm, tn), lambda i, j, k: (i, j)),
                    scratch_shapes=[pltpu.VMEM((tm, tn), jnp.float32)],
                ),
                compiler_params=pltpu.CompilerParams(
                    dimension_semantics=("parallel", "parallel", "arbitrary"),
                    vmem_limit_bytes=vmem,
                ),
            )(x_p, self.w_kn, self.b_pad)

        return out_p[:B, : self.out_features]


if __name__ == "__main__":
    key = jax.random.PRNGKey(0)

    # --- 1. Small shapes consistent with the module's forward ---------------
    batch, input_size, output_size = 8, 32, 16
    kx, kw, kb = jax.random.split(key, 3)
    x = jax.random.normal(kx, (batch, input_size), dtype=jnp.float32)
    bound = 1.0 / (input_size ** 0.5)  # mimic nn.Linear's uniform init
    weight = jax.random.uniform(kw, (output_size, input_size),
                                minval=-bound, maxval=bound, dtype=jnp.float32)
    bias = jax.random.uniform(kb, (output_size,),
                              minval=-bound, maxval=bound, dtype=jnp.float32)

    model = LinearRegressionPallas(weight, bias)
    out = model(x)
    jax.block_until_ready(out)
    ref = x @ weight.T + bias
    assert out.shape == (batch, output_size)
    assert jnp.allclose(out, ref, atol=1e-3, rtol=1e-3)

    # --- 2. Larger, 128-aligned but not tile-aligned shapes (single-k fast
    #        path, multi-block grid, no K padding waste) ---------------------
    B2, IN2, OUT2 = 384, 640, 384
    k2x, k2w, k2b = jax.random.split(jax.random.PRNGKey(1), 3)
    x2 = jax.random.normal(k2x, (B2, IN2), dtype=jnp.float32)
    b2 = 1.0 / (IN2 ** 0.5)
    w2 = jax.random.uniform(k2w, (OUT2, IN2), minval=-b2, maxval=b2, dtype=jnp.float32)
    bi2 = jax.random.uniform(k2b, (OUT2,), minval=-b2, maxval=b2, dtype=jnp.float32)

    model2 = LinearRegressionPallas(w2, bi2)
    out2 = model2(x2)
    jax.block_until_ready(out2)
    ref2 = x2 @ w2.T + bi2
    assert out2.shape == (B2, OUT2)
    assert jnp.allclose(out2, ref2, atol=2e-2, rtol=2e-2)

    # --- 3. Large-K shape: exercises the multi-k accumulator path and the
    #        GEMV-regime tile sizing ----------------------------------------
    B3, IN3, OUT3 = 64, 4096, 256
    k3x, k3w, k3b = jax.random.split(jax.random.PRNGKey(2), 3)
    x3 = jax.random.normal(k3x, (B3, IN3), dtype=jnp.float32)
    b3 = 1.0 / (IN3 ** 0.5)
    w3 = jax.random.uniform(k3w, (OUT3, IN3), minval=-b3, maxval=b3, dtype=jnp.float32)
    bi3 = jax.random.uniform(k3b, (OUT3,), minval=-b3, maxval=b3, dtype=jnp.float32)

    model3 = LinearRegressionPallas(w3, bi3)
    out3 = model3(x3)
    jax.block_until_ready(out3)
    ref3 = x3 @ w3.T + bi3
    assert out3.shape == (B3, OUT3)
    assert jnp.allclose(out3, ref3, atol=2e-2, rtol=2e-2)

    # --- 4. bfloat16 compute path (f32 accumulator, f32 output) -------------
    model_bf16 = LinearRegressionPallas(w2, bi2, compute_dtype=jnp.bfloat16)
    out_bf16 = model_bf16(x2)
    jax.block_until_ready(out_bf16)
    assert out_bf16.shape == (B2, OUT2)
    assert jnp.allclose(out_bf16, ref2, atol=5e-2, rtol=5e-2)

    print("KERNEL_OK")
</pallas_src>

<mosaic_0001>
module attributes {stable_mosaic.version = 11 : i64} {
  func.func @_linear_kernel_single(%arg0: i32, %arg1: i32, %arg2: memref<8x128xf32, #tpu.memory_space<vmem>>, %arg3: memref<128x128xf32, #tpu.memory_space<vmem>>, %arg4: memref<1x128xf32, #tpu.memory_space<vmem>>, %arg5: memref<8x128xf32, #tpu.memory_space<vmem>>) attributes {dimension_semantics = [#tpu.dimension_semantics<parallel>, #tpu.dimension_semantics<parallel>], iteration_bounds = array<i64: 1, 1>, scalar_prefetch = 0 : i64, scratch_operands = 0 : i64, tpu.core_type = #tpu.core_type<tc>, window_params = [{transform_indices = @transform_0, window_bounds = array<i64: 8, 128>}, {transform_indices = @transform_1, window_bounds = array<i64: 128, 128>}, {transform_indices = @transform_2, window_bounds = array<i64: 1, 128>}, {transform_indices = @transform_3, window_bounds = array<i64: 8, 128>}]} {
    %c0 = arith.constant 0 : index
    %c0_0 = arith.constant 0 : index
    %0 = vector.load %arg2[%c0, %c0_0] : memref<8x128xf32, #tpu.memory_space<vmem>>, vector<8x128xf32>
    %c0_1 = arith.constant 0 : index
    %c0_2 = arith.constant 0 : index
    %1 = vector.load %arg3[%c0_1, %c0_2] : memref<128x128xf32, #tpu.memory_space<vmem>>, vector<128x128xf32>
    %cst = arith.constant dense<0.000000e+00> : vector<8x128xf32>
    %2 = tpu.matmul %0, %1, %cst {dimension_numbers = #tpu.dot_dimension_numbers<[1], [0], [0], [1], [0, 0, 1, 1], [], []>} : vector<8x128xf32>, vector<128x128xf32>, vector<8x128xf32> -> vector<8x128xf32>
    %c0_3 = arith.constant 0 : index
    %c0_4 = arith.constant 0 : index
    %3 = vector.load %arg4[%c0_3, %c0_4] : memref<1x128xf32, #tpu.memory_space<vmem>>, vector<1x128xf32>
    %4 = vector.broadcast %3 : vector<1x128xf32> to vector<8x128xf32>
    %5 = arith.addf %2, %4 : vector<8x128xf32>
    %c0_5 = arith.constant 0 : index
    %c0_6 = arith.constant 0 : index
    %6 = vector.load %arg5[%c0_5, %c0_6] : memref<8x128xf32, #tpu.memory_space<vmem>>, vector<8x128xf32>
    tpu.vector_store %arg5[%c0_5, %c0_6], %5 {strides = array<i32>} : memref<8x128xf32, #tpu.memory_space<vmem>>, vector<8x128xf32>,
    return
  }
  func.func @transform_0(%arg0: i32, %arg1: i32) -> (i32, i32) {
    %c0_i32 = arith.constant 0 : i32
    %c0_i32_0 = arith.constant 0 : i32
    return %arg0, %c0_i32 : i32, i32
  }
  func.func @transform_1(%arg0: i32, %arg1: i32) -> (i32, i32) {
    %c0_i32 = arith.constant 0 : i32
    %c0_i32_0 = arith.constant 0 : i32
    return %c0_i32, %arg1 : i32, i32
  }
  func.func @transform_2(%arg0: i32, %arg1: i32) -> (i32, i32) {
    %c0_i32 = arith.constant 0 : i32
    %c0_i32_0 = arith.constant 0 : i32
    return %c0_i32, %arg1 : i32, i32
  }
  func.func @transform_3(%arg0: i32, %arg1: i32) -> (i32, i32) {
    %c0_i32 = arith.constant 0 : i32
    return %arg0, %arg1 : i32, i32
  }
}

</mosaic_0001>

<bundles_post_ra>
// kernel: tpu_custom_call.1
= control target key start
LH: loop header
LB: loop body
LE: loop exit
PB: predicated region body
PF: predicated region fallthrough
CT: control target
= control target key end

     0   :  { %8 = vsyncpa [#allocation3], 0  ;;  %s383_s0 = inlined_call_operand.hbm [shape: f32[8,128], index: 0, kind: input, shape index: {}]   ;;  %s384_s1 = inlined_call_operand.hbm [shape: f32[128,128], index: 1, kind: input, shape index: {}]   ;;  %s385_s2 = inlined_call_operand.vmem [shape: f32[1,128], index: 2, kind: input, shape index: {}]   ;;  %s386_s3 = inlined_call_operand.hbm [shape: f32[8,128], index: 3, kind: output, shape index: {}]  }
   0x1   :  { %9 = vsyncpa [#allocation6], 0 }
   0x2   :  { %10 = vsyncpa [#allocation4], 0  ;;  %s309_s12 = smov [#allocation2]   ;;  %s310_s14 = smov [#allocation5]  }
   0x3   :  { %s17_s13 = sshll.u32 %s309_s12, 4  ;;  %s26_s15 = sshll.u32 %s310_s14, 4  ;;  %s18_s13 = int_to_ptr.vmem [resolvable:$true] %s17_s13  ;;  %s337_s15 = int_to_ptr.vmem [resolvable:$true] %s26_s15 }
   0x4   :  { %s237_s18 = scalar_lea.hbm %s383_s0, 128 }
   0x5   :  { %p238_p0 = scmp.ne.s32.totalorder %s383_s0, %s237_s18  ;;  %p241_p1 = scmp.lt.u32.totalorder %s237_s18, %s383_s0 }
   0x7   :  { %p243_p2 = pnand %p241_p1, %p238_p0 }
   0x9   :  { %246 = shalt.err (!%p243_p2)
}
   0xa   :  { %s247_s23 = scalar_lea.vmem %s18_s13, 128  ;;  %p252_p4 = scmp.lt.s32.totalorder %s18_s13, %s18_s13 }
   0xb   :  { %p248_p3 = scmp.ne.s32.totalorder %s18_s13, %s247_s23  ;;  %p253_p5 = scmp.lt.s32.totalorder %s247_s23, %s247_s23 }
   0xd   :  { %p254_p6 = por %p253_p5, %p252_p4 }
   0xf   :  { %p255_p7 = pnand %p254_p6, %p248_p3 }
  0x11   :  { %258 = shalt.err (!%p255_p7)
}
  0x12   :  { %20 = dma.hbm_to_vmem [thread:$0]  %s383_s0, 128, %s18_s13, [#allocation3]  }
  0x13   :  { %s259_s28 = scalar_lea.hbm %s384_s1, 2048 }
  0x14   :  { %p260_p8 = scmp.ne.s32.totalorder %s384_s1, %s259_s28  ;;  %p263_p9 = scmp.lt.u32.totalorder %s259_s28, %s384_s1 }
  0x16   :  { %p265_p10 = pnand %p263_p9, %p260_p8 }
  0x18   :  { %268 = shalt.err (!%p265_p10)
}
  0x19   :  { %s269_s6 = scalar_lea.vmem %s337_s15, 2048  ;;  %p274_p12 = scmp.lt.s32.totalorder %s337_s15, %s337_s15 }
  0x1a   :  { %p270_p11 = scmp.ne.s32.totalorder %s337_s15, %s269_s6  ;;  %p275_p13 = scmp.lt.s32.totalorder %s269_s6, %s269_s6 }
  0x1c   :  { %p276_p0 = por %p275_p13, %p274_p12 }
  0x1e   :  { %p277_p1 = pnand %p276_p0, %p270_p11 }
  0x20   :  { %280 = shalt.err (!%p277_p1)
}
  0x21   :  { %s311_s0 = smov 128   ;;  %s312_s7 = smov 8  }
  0x22   :  { %32 = dma.hbm_to_vmem [thread:$0]  %s384_s1, 2048, %s337_s15, [#allocation6], %s311_s0, %s311_s0, %s312_s7  }
  0x23   :  { %303 = dma.done.wait [#allocation3], 128  }
  0x24   :  { %304 = vsyncadd [#allocation3], 4294967168 }
  0x25   :  { %305 = dma.done.wait [#allocation6], 2048  }
  0x26   :  { %306 = vsyncadd [#allocation6], 4294965248  ;;  %v313_v0 = vmov 0.0|0.0   ;;  %vm314_vm0 = vmmov 0   ;;  %v315_v1 = vmov 0.0   ;;  %v42_v2 = vld [vmem:[#allocation5] sm:$0xff] }
  0x27   :  { %205 = vmatprep.subr.bf16.mxu0 %v313_v0  ;;  %202 = vmatprep.mubr.msk.f32.mxu0 %vm314_vm0, %v315_v1  ;;  %v43_v3 = vld [vmem:[#allocation5 + $0x8] sm:$0xff]  ;;  %v44_v4 = vld [vmem:[#allocation5 + $0x10] sm:$0xff]  ;;  %v45_v6 = vld [vmem:[#allocation5 + $0x18] sm:$0xff]  ;;  %s316_s11 = smov [#allocation7]  }
  0x28   :  { %v206_v5 = vpack.c.bf16 %v43_v3, %v42_v2  ;;  %v209_v7 = vpack.c.bf16 %v45_v6, %v44_v4  ;;  %v46_v8 = vld [vmem:[#allocation5 + $0x20] sm:$0xff]  ;;  %v47_v9 = vld [vmem:[#allocation5 + $0x28] sm:$0xff]  ;;  %v48_v11 = vld [vmem:[#allocation5 + $0x30] sm:$0xff]  ;;  %s142_s12 = sshll.u32 %s316_s11, 4  ;;  %s143_s12 = int_to_ptr.vmem [resolvable:$true] %s142_s12 }
  0x29   :  { %v212_v10 = vpack.c.bf16 %v47_v9, %v46_v8  ;;  %v49_v12 = vld [vmem:[#allocation5 + $0x38] sm:$0xff]  ;;  %v50_v14 = vld [vmem:[#allocation5 + $0x40] sm:$0xff]  ;;  %v51_v15 = vld [vmem:[#allocation5 + $0x48] sm:$0xff]  ;;  %s281_s13 = scalar_lea.vmem %s143_s12, 128  ;;  %p286_p3 = scmp.lt.s32.totalorder %s143_s12, %s143_s12 }
  0x2a   :  { %207 = vmatpush3.bf16.msra.mxu0 %v206_v5  ;;  %v215_v13 = vpack.c.bf16 %v49_v12, %v48_v11  ;;  %v218_v16 = vpack.c.bf16 %v51_v15, %v50_v14  ;;  %v52_v17 = vld [vmem:[#allocation5 + $0x50] sm:$0xff]  ;;  %v53_v18 = vld [vmem:[#allocation5 + $0x58] sm:$0xff]  ;;  %v54_v20 = vld [vmem:[#allocation5 + $0x60] sm:$0xff]  ;;  %p282_p2 = scmp.ne.s32.totalorder %s143_s12, %s281_s13  ;;  %p287_p4 = scmp.lt.s32.totalorder %s281_s13, %s281_s13 }
  0x2b   :  { %208 = vmatprep.subr.bf16.mxu0 %v313_v0  ;;  %v221_v19 = vpack.c.bf16 %v53_v18, %v52_v17  ;;  %v55_v21 = vld [vmem:[#allocation5 + $0x68] sm:$0xff]  ;;  %v56_v23 = vld [vmem:[#allocation5 + $0x70] sm:$0xff]  ;;  %v57_v24 = vld [vmem:[#allocation5 + $0x78] sm:$0xff] }
  0x2c   :  { %v224_v22 = vpack.c.bf16 %v55_v21, %v54_v20  ;;  %v227_v25 = vpack.c.bf16 %v57_v24, %v56_v23  ;;  %v41_v26 = vld [vmem:[#allocation2] sm:$0xff]  ;;  %p288_p5 = por %p287_p4, %p286_p3 }
  0x2d   :  { %v152_v27 = vld [vmem:[%s385_s2] ss:$0 sm:$0xff] }
  0x2e   :  { %210 = vmatpush3.bf16.msra.mxu0 %v209_v7  ;;  %p289_p6 = pnand %p288_p5, %p282_p2 }
  0x2f   :  { %211 = vmatprep.subr.bf16.mxu0 %v313_v0 }
  0x32   :  { %213 = vmatpush3.bf16.msra.mxu0 %v212_v10 }
  0x33   :  { %214 = vmatprep.subr.bf16.mxu0 %v313_v0 }
  0x36   :  { %216 = vmatpush3.bf16.msra.mxu0 %v215_v13 }
  0x37   :  { %217 = vmatprep.subr.bf16.mxu0 %v313_v0 }
  0x3a   :  { %219 = vmatpush3.bf16.msra.mxu0 %v218_v16 }
  0x3b   :  { %220 = vmatprep.subr.bf16.mxu0 %v313_v0 }
  0x3e   :  { %222 = vmatpush3.bf16.msra.mxu0 %v221_v19 }
  0x3f   :  { %223 = vmatprep.subr.bf16.mxu0 %v313_v0 }
  0x42   :  { %225 = vmatpush3.bf16.msra.mxu0 %v224_v22 }
  0x43   :  { %226 = vmatprep.subr.bf16.mxu0 %v313_v0 }
  0x46   :  { %228 = vmatpush3.bf16.msra.mxu0 %v227_v25 }
  0x49   :  { %203 = vmatmul.mubr.f32.vlgmr.msra.gmra.mrb[0].mxu0 %v41_v26 }
 0x11c   :  { %v131_v28 = vpop.f32.mrb[0].mxu0 }
 0x11d   :  { %v132_v29 = vadd.f32 %v152_v27, %v131_v28  ;;  %v204_v30 = vpop.f32.mrb[1].mxu0 }
 0x11f   :  { %135 = vst [vmem:[#allocation7] sm:$0xff] %v132_v29 }
 0x120   :  { %292 = shalt.err (!%p289_p6)
}
 0x121   :  { %s293_s16 = scalar_lea.hbm %s386_s3, 128 }
 0x122   :  { %p294_p7 = scmp.ne.s32.totalorder %s386_s3, %s293_s16  ;;  %p297_p8 = scmp.lt.u32.totalorder %s293_s16, %s386_s3 }
 0x124   :  { %p299_p9 = pnand %p297_p8, %p294_p7 }
 0x126   :  { %302 = shalt.err (!%p299_p9)
}
 0x127   :  { %145 = dma.vmem_to_hbm [thread:$0]  %s143_s12, 128, %s386_s3, [#allocation4]  }
 0x128   :  { %307 = dma.done.wait [#allocation4], 128  }
 0x129   :  { %308 = vsyncadd [#allocation4], 4294967168 }
 0x12a   :  { %149 = vsyncpa [#allocation3], 1 }
 0x12b   :  { %150 = vsyncpa [#allocation6], 1 }
 0x12c   :  { %151 = vsyncpa [#allocation4], 1 }

</bundles_post_ra>
